<compile_context>
chip_gen: v7x
topology: tpu7x:2x2x1
jax: 0.10.0
libtpu: 0.0.40
codegen_flags: <defaults>
</compile_context>

<pallas_src>
import math

import jax
import jax.numpy as jnp
from jax.experimental import pallas as pl
from jax.experimental.pallas import tpu as pltpu

LANE = 128            # TPU lane width
NP = 8                # fused (policy|value) head rows, padded to one sublane group
TILE_B_SMALL = 1024   # single-tile threshold (overhead-bound regime anyway)
TILE_B_LARGE = 2048   # tile cap for very large batches


def actor_critic_kernel(x_ref, w1_ref, b1_ref, wh_ref, bh_ref, out_ref):
    """Fused ActorCritic forward with the batch kept in lanes.

      x_ref  : (1, TB)   states (any dtype), lane-dense row
      w1_ref : (H, 1)    fc1.weight        (PyTorch layout)
      b1_ref : (H, 1)    fc1.bias
      wh_ref : (NP, H)   [fc_policy.weight ; fc_value.weight ; zero pad]
      bh_ref : (NP, 1)   [fc_policy.bias   ; fc_value.bias   ; zero pad]
      out_ref: (NP, TB)  [logits^T ; value^T ; pad]
    """
    # Cast in-kernel (no standalone XLA convert op before the pallas_call).
    x = x_ref[...].astype(jnp.float32)                           # (1, TB)
    # fc1 has K=1: it is an outer product -> VPU broadcast multiply, never the MXU.
    h = jnp.maximum(w1_ref[...] * x + b1_ref[...], 0.0)          # (H, TB)
    # Single MXU pass for both heads; output stays lane-dense over the batch.
    out_ref[...] = (
        jnp.dot(wh_ref[...], h, preferred_element_type=jnp.float32)
        + bh_ref[...]
    )                                                             # (NP, TB)


def _choose_tiling(batch):
    """Return (padded_batch, batch_tile).

    * batch <= TILE_B_SMALL: a single full-array tile (no padding needed; the
      kernel is launch/step-overhead bound in this regime).
    * larger batches: 1024/2048-lane tiles (multiples of 128 -> dense DMAs),
      batch padded to a tile multiple, so the grid has >= 2 steps and
      dimension_semantics=("parallel",) shards work across v7x's two
      TensorCores while each step's VMEM footprint stays well under 1 MiB.
    """
    if batch <= TILE_B_SMALL:
        return batch, batch
    tile = TILE_B_SMALL if batch <= 4 * TILE_B_SMALL else TILE_B_LARGE
    padded = pl.cdiv(batch, tile) * tile
    return padded, tile


def actor_critic_forward(state, fused, *, action_dim):
    """state: (B,) any float/int dtype -> (policy_logits (B, A), value (B, 1))."""
    w1, b1 = fused["w1"], fused["b1"]          # (H, 1), (H, 1)
    wh, bh = fused["w_head"], fused["b_head"]  # (NP, H), (NP, 1)
    B = state.shape[0]
    H = w1.shape[0]

    B_pad, TILE_B = _choose_tiling(B)
    x = state.reshape(1, B)                    # metadata-only reshape, no cast
    if B_pad != B:
        x = jnp.pad(x, ((0, 0), (0, B_pad - B)))   # zero-padded tail columns

    grid = (B_pad // TILE_B,)
    cost = pl.CostEstimate(
        flops=2 * B_pad * H * NP + 3 * B_pad * H,
        transcendentals=0,
        bytes_accessed=B_pad * x.dtype.itemsize      # states in
        + NP * B_pad * 4                             # fused head out
        + (2 * H + NP * H + NP) * 4,                 # weights/biases
    )

    out = pl.pallas_call(
        actor_critic_kernel,
        out_shape=jax.ShapeDtypeStruct((NP, B_pad), jnp.float32),
        grid=grid,
        in_specs=[
            pl.BlockSpec((1, TILE_B), lambda i: (0, i)),   # x: lane-dense row
            pl.BlockSpec((H, 1), lambda i: (0, 0)),        # w1: VMEM-resident
            pl.BlockSpec((H, 1), lambda i: (0, 0)),        # b1
            pl.BlockSpec((NP, H), lambda i: (0, 0)),       # w_head
            pl.BlockSpec((NP, 1), lambda i: (0, 0)),       # b_head
        ],
        out_specs=pl.BlockSpec((NP, TILE_B), lambda i: (0, i)),
        compiler_params=pltpu.CompilerParams(
            dimension_semantics=("parallel",)),            # 2-TC sharding on v7x
        cost_estimate=cost,
    )(x, w1, b1, wh, bh)

    policy_logits = out[:action_dim, :B].T                 # (B, A)
    value = out[action_dim:action_dim + 1, :B].T           # (B, 1)
    # TODO(synk): at RL step sizes the remaining cost is launch/dispatch
    # overhead; fusing softmax/sampling/log-prob into the kernel tail (EUP exp
    # is a free slot) or batching many timesteps per call is the next-level
    # win, but would change this module's (logits, value) interface.
    return policy_logits, value


def init_params(key, state_dim=1, action_dim=2, hidden_size=32):
    """nn.Linear-style U(-1/sqrt(fan_in), +1/sqrt(fan_in)) init, PyTorch layouts."""
    del state_dim  # the PyTorch module hard-codes Linear(1, hidden_size)
    keys = jax.random.split(key, 6)

    def uniform(k, shape, fan_in):
        bound = 1.0 / math.sqrt(fan_in)
        return jax.random.uniform(k, shape, jnp.float32, -bound, bound)

    return {
        "w1": uniform(keys[0], (hidden_size, 1), 1),                  # fc1.weight
        "b1": uniform(keys[1], (hidden_size,), 1),                    # fc1.bias
        "wp": uniform(keys[2], (action_dim, hidden_size), hidden_size),  # fc_policy.weight
        "bp": uniform(keys[3], (action_dim,), hidden_size),              # fc_policy.bias
        "wv": uniform(keys[4], (1, hidden_size), hidden_size),           # fc_value.weight
        "bv": uniform(keys[5], (1,), hidden_size),                       # fc_value.bias
    }


def fuse_head_params(params):
    """One-time setup: stack policy|value head rows, zero-pad to NP sublanes."""
    wp, bp, wv, bv = params["wp"], params["bp"], params["wv"], params["bv"]
    A, H = wp.shape
    assert A + 1 <= NP, "action_dim + 1 must fit in the padded head rows"
    w_head = (jnp.zeros((NP, H), jnp.float32)
              .at[:A].set(wp)
              .at[A:A + 1].set(wv))
    b_head = (jnp.zeros((NP, 1), jnp.float32)
              .at[:A, 0].set(bp)
              .at[A, 0].set(bv[0]))
    fused = {
        "w1": params["w1"],                  # (H, 1)
        "b1": params["b1"].reshape(H, 1),    # (H, 1)
        "w_head": w_head,                    # (NP, H)
        "b_head": b_head,                    # (NP, 1)
    }
    return fused, A


if __name__ == "__main__":
    key = jax.random.PRNGKey(0)
    pkey, skey, skey2 = jax.random.split(key, 3)

    B, A, H = 8, 2, 32
    params = init_params(pkey, state_dim=1, action_dim=A, hidden_size=H)
    fused, action_dim = fuse_head_params(params)

    fwd = jax.jit(actor_critic_forward, static_argnames="action_dim")

    def reference(s):
        x = s.astype(jnp.float32)[:, None]
        h = jnp.maximum(x @ params["w1"].T + params["b1"][None, :], 0.0)
        return (h @ params["wp"].T + params["bp"][None, :],
                h @ params["wv"].T + params["bv"][None, :])

    # 1) Small RL-sized batch (single-tile path, no padding).
    state = jax.random.normal(skey, (B,), jnp.float32)
    logits, value = fwd(state, fused, action_dim=action_dim)
    jax.block_until_ready((logits, value))
    ref_logits, ref_value = reference(state)
    assert logits.shape == (B, A) and value.shape == (B, 1)
    assert jnp.allclose(logits, ref_logits, atol=1e-5), (logits, ref_logits)
    assert jnp.allclose(value, ref_value, atol=1e-5), (value, ref_value)

    # 2) Batch that is not a tile multiple (padded, multi-tile, parallel grid).
    B2 = 1536
    state2 = jax.random.normal(skey2, (B2,), jnp.float32)
    logits2, value2 = fwd(state2, fused, action_dim=action_dim)
    jax.block_until_ready((logits2, value2))
    ref_logits2, ref_value2 = reference(state2)
    assert logits2.shape == (B2, A) and value2.shape == (B2, 1)
    assert jnp.allclose(logits2, ref_logits2, atol=1e-5)
    assert jnp.allclose(value2, ref_value2, atol=1e-5)

    print("KERNEL_OK")
</pallas_src>

<mosaic_0001>
module attributes {stable_mosaic.version = 11 : i64} {
  func.func @actor_critic_kernel(%arg0: i32, %arg1: memref<1x8xf32, #tpu.memory_space<vmem>>, %arg2: memref<32x1xf32, #tpu.memory_space<vmem>>, %arg3: memref<32x1xf32, #tpu.memory_space<vmem>>, %arg4: memref<8x32xf32, #tpu.memory_space<vmem>>, %arg5: memref<8x1xf32, #tpu.memory_space<vmem>>, %arg6: memref<8x8xf32, #tpu.memory_space<vmem>>) attributes {dimension_semantics = [#tpu.dimension_semantics<parallel>], iteration_bounds = array<i64: 1>, scalar_prefetch = 0 : i64, scratch_operands = 0 : i64, tpu.core_type = #tpu.core_type<tc>, window_params = [{transform_indices = @transform_0, window_bounds = array<i64: 1, 8>}, {pipeline_mode = #tpu.pipeline_mode<synchronous>, transform_indices = @transform_1, window_bounds = array<i64: 32, 1>}, {pipeline_mode = #tpu.pipeline_mode<synchronous>, transform_indices = @transform_2, window_bounds = array<i64: 32, 1>}, {pipeline_mode = #tpu.pipeline_mode<synchronous>, transform_indices = @transform_3, window_bounds = array<i64: 8, 32>}, {pipeline_mode = #tpu.pipeline_mode<synchronous>, transform_indices = @transform_4, window_bounds = array<i64: 8, 1>}, {transform_indices = @transform_5, window_bounds = array<i64: 8, 8>}]} {
    %c0 = arith.constant 0 : index
    %c0_0 = arith.constant 0 : index
    %0 = vector.load %arg1[%c0, %c0_0] : memref<1x8xf32, #tpu.memory_space<vmem>>, vector<1x8xf32>
    %c0_1 = arith.constant 0 : index
    %c0_2 = arith.constant 0 : index
    %1 = vector.load %arg2[%c0_1, %c0_2] : memref<32x1xf32, #tpu.memory_space<vmem>>, vector<32x1xf32>
    %2 = vector.broadcast %1 : vector<32x1xf32> to vector<32x8xf32>
    %3 = vector.broadcast %0 : vector<1x8xf32> to vector<32x8xf32>
    %4 = arith.mulf %2, %3 : vector<32x8xf32>
    %c0_3 = arith.constant 0 : index
    %c0_4 = arith.constant 0 : index
    %5 = vector.load %arg3[%c0_3, %c0_4] : memref<32x1xf32, #tpu.memory_space<vmem>>, vector<32x1xf32>
    %6 = vector.broadcast %5 : vector<32x1xf32> to vector<32x8xf32>
    %7 = arith.addf %4, %6 : vector<32x8xf32>
    %cst = arith.constant 0.000000e+00 : f32
    %8 = vector.broadcast %cst : f32 to vector<32x8xf32>
    %9 = arith.maximumf %7, %8 : vector<32x8xf32>
    %c0_5 = arith.constant 0 : index
    %c0_6 = arith.constant 0 : index
    %10 = vector.load %arg4[%c0_5, %c0_6] : memref<8x32xf32, #tpu.memory_space<vmem>>, vector<8x32xf32>
    %cst_7 = arith.constant dense<0.000000e+00> : vector<8x8xf32>
    %11 = tpu.matmul %10, %9, %cst_7 {dimension_numbers = #tpu.dot_dimension_numbers<[1], [0], [0], [1], [0, 0, 1, 1], [], []>} : vector<8x32xf32>, vector<32x8xf32>, vector<8x8xf32> -> vector<8x8xf32>
    %c0_8 = arith.constant 0 : index
    %c0_9 = arith.constant 0 : index
    %12 = vector.load %arg5[%c0_8, %c0_9] : memref<8x1xf32, #tpu.memory_space<vmem>>, vector<8x1xf32>
    %13 = vector.broadcast %12 : vector<8x1xf32> to vector<8x8xf32>
    %14 = arith.addf %11, %13 : vector<8x8xf32>
    %c0_10 = arith.constant 0 : index
    %c0_11 = arith.constant 0 : index
    %15 = vector.load %arg6[%c0_10, %c0_11] : memref<8x8xf32, #tpu.memory_space<vmem>>, vector<8x8xf32>
    tpu.vector_store %arg6[%c0_10, %c0_11], %14 {strides = array<i32>} : memref<8x8xf32, #tpu.memory_space<vmem>>, vector<8x8xf32>,
    return
  }
  func.func @transform_0(%arg0: i32) -> (i32, i32) {
    %c0_i32 = arith.constant 0 : i32
    %c0_i32_0 = arith.constant 0 : i32
    return %c0_i32, %arg0 : i32, i32
  }
  func.func @transform_1(%arg0: i32) -> (i32, i32) {
    %c0_i32 = arith.constant 0 : i32
    %c0_i32_0 = arith.constant 0 : i32
    %c0_i32_1 = arith.constant 0 : i32
    return %c0_i32, %c0_i32_0 : i32, i32
  }
  func.func @transform_2(%arg0: i32) -> (i32, i32) {
    %c0_i32 = arith.constant 0 : i32
    %c0_i32_0 = arith.constant 0 : i32
    %c0_i32_1 = arith.constant 0 : i32
    return %c0_i32, %c0_i32_0 : i32, i32
  }
  func.func @transform_3(%arg0: i32) -> (i32, i32) {
    %c0_i32 = arith.constant 0 : i32
    %c0_i32_0 = arith.constant 0 : i32
    %c0_i32_1 = arith.constant 0 : i32
    return %c0_i32, %c0_i32_0 : i32, i32
  }
  func.func @transform_4(%arg0: i32) -> (i32, i32) {
    %c0_i32 = arith.constant 0 : i32
    %c0_i32_0 = arith.constant 0 : i32
    %c0_i32_1 = arith.constant 0 : i32
    return %c0_i32, %c0_i32_0 : i32, i32
  }
  func.func @transform_5(%arg0: i32) -> (i32, i32) {
    %c0_i32 = arith.constant 0 : i32
    %c0_i32_0 = arith.constant 0 : i32
    return %c0_i32, %arg0 : i32, i32
  }
}

</mosaic_0001>

<bundles_post_ra>
// kernel: actor_critic_forward.1
= control target key start
LH: loop header
LB: loop body
LE: loop exit
PB: predicated region body
PF: predicated region fallthrough
CT: control target
= control target key end

     0   :  { %v204_v0 = vmov 0   ;;  %v205_v9 = vmov 0.0|0.0   ;;  %vm206_vm0 = vmmov 0   ;;  %v207_v11 = vmov 0.0   ;;  %s274_s2 = inlined_call_operand.vmem [shape: f32[32,1], index: 2, kind: input, shape index: {}]   ;;  %s275_s1 = inlined_call_operand.vmem [shape: f32[32,1], index: 1, kind: input, shape index: {}]   ;;  %s276_s4 = inlined_call_operand.vmem [shape: f32[8,1], index: 4, kind: input, shape index: {}]   ;;  %s277_s0 = inlined_call_operand.vmem [shape: f32[1,8], index: 0, kind: input, shape index: {}]   ;;  %s278_s3 = inlined_call_operand.vmem [shape: f32[8,32], index: 3, kind: input, shape index: {}]   ;;  %s279_s5 = inlined_call_operand.vmem [shape: f32[8,8], index: 5, kind: output, shape index: {}]  }
   0x1   :  { %203 = vset.pattern.permute.xlu1 %v204_v0  ;;  %202 = vset.pattern.permute.xlu0 %v204_v0  ;;  %v55_v1 = vld [vmem:[%s274_s2] sm:$0xff]  ;;  %v56_v3 = vld [vmem:[%s274_s2 + $0x8] sm:$0xff]  ;;  %v24_v5 = vld [vmem:[%s275_s1 + $0x18] sm:$0xff]  ;;  %vm94_vm1 = vcmask 261120   ;;  %vm168_vm2 = vcmask 64512  }
   0x2   :  { %v21_v2 = vld [vmem:[%s275_s1] sm:$0xff]  ;;  %61 = vperm.xlu1 %203, %v55_v1   ;;  %v22_v4 = vld [vmem:[%s275_s1 + $0x8] sm:$0xff]  ;;  %v23_v6 = vld [vmem:[%s275_s1 + $0x10] sm:$0xff]  ;;  %192 = vmatprep.subr.bf16.mxu0 %v205_v9 }
   0x3   :  { %27 = vperm.xlu0 %202, %v21_v2   ;;  %v58_v7 = vld [vmem:[%s274_s2 + $0x18] sm:$0xff]  ;;  %v57_v8 = vld [vmem:[%s274_s2 + $0x10] sm:$0xff]  ;;  %v88_v10 = vld [vmem:[%s276_s4] sm:$0xff]  ;;  %189 = vmatprep.mubr.msk.f32.mxu0 %vm206_vm0, %v207_v11 }
   0x4   :  { %v174_v12 = vld [vmem:[%s277_s0] ss:$0 sm:$0xff] }
   0x5   :  { %v87_v35 = vld [vmem:[%s278_s3] sm:$0xff] }
   0x6   :  { %66 = vperm.xlu1 %203, %v56_v3  }
   0x7   :  { %32 = vperm.xlu0 %202, %v22_v4  }
   0xa   :  { %42 = vperm.xlu1 %203, %v24_v5  }
   0xb   :  { %37 = vperm.xlu0 %202, %v23_v6  }
   0xe   :  { %76 = vperm.xlu1 %203, %v58_v7  }
   0xf   :  { %71 = vperm.xlu0 %202, %v57_v8  }
  0x13   :  { %91 = vperm.xlu0 %202, %v88_v10  }
  0x81   :  { %v62_v13 = vpop.permute.xlu1 %61 }
  0x82   :  { %v28_v14 = vpop.permute.xlu0 %27 }
  0x83   :  { %v51_v15 = vmul.f32 %v174_v12, %v28_v14 }
  0x85   :  { %v67_v16 = vpop.permute.xlu1 %66  ;;  %v79_v18 = vadd.f32 %v62_v13, %v51_v15 }
  0x86   :  { %v33_v17 = vpop.permute.xlu0 %32 }
  0x87   :  { %v52_v19 = vmul.f32 %v174_v12, %v33_v17  ;;  %v83_v23 = vmax.f32 %v79_v18, 0.0 }
  0x89   :  { %v80_v20 = vadd.f32 %v67_v16, %v52_v19  ;;  %v43_v21 = vpop.permute.xlu1 %42 }
  0x8a   :  { %v38_v22 = vpop.permute.xlu0 %37  ;;  %v54_v25 = vmul.f32 %v174_v12, %v43_v21 }
  0x8b   :  { %v84_v24 = vmax.f32 %v80_v20, 0.0  ;;  %v53_v26 = vmul.f32 %v174_v12, %v38_v22 }
  0x8d   :  { %v193_v27 = vpack.c.bf16 %v84_v24, %v83_v23  ;;  %v77_v28 = vpop.permute.xlu1 %76 }
  0x8e   :  { %v72_v29 = vpop.permute.xlu0 %71  ;;  %v82_v30 = vadd.f32 %v77_v28, %v54_v25 }
  0x8f   :  { %v81_v31 = vadd.f32 %v72_v29, %v53_v26  ;;  %194 = vmatpush3.bf16.msra.mxu0 %v193_v27 }
  0x90   :  { %195 = vmatprep.subr.bf16.mxu0 %v205_v9  ;;  %v86_v32 = vmax.f32 %v82_v30, 0.0 }
  0x91   :  { %v85_v33 = vmax.f32 %v81_v31, 0.0 }
  0x92   :  { %v92_v36 = vpop.permute.xlu0 %91 }
  0x93   :  { %v196_v34 = vpack.c.bf16 %v86_v32, %v85_v33 }
  0x95   :  { %197 = vmatpush3.bf16.msra.mxu0 %v196_v34 }
  0x98   :  { %190 = vmatmul.mubr.msk.f32.vlgmr.msra.gmra.mrb[0].mxu0 %vm94_vm1, %v87_v35 }
 0x16b   :  { %v164_v37 = vpop.f32.mrb[0].mxu0 }
 0x16c   :  { %v165_v38 = vadd.f32 %v164_v37, %v92_v36  ;;  %v191_v39 = vpop.f32.mrb[1].mxu0 }
 0x16e   :  { %169 = vst.msk [vmem:[%s279_s5] sm:$0xff] %vm168_vm2, %v165_v38 }

</bundles_post_ra>
